<compile_context>
chip_gen: v7x
topology: tpu7x:2x2x1
jax: 0.10.0
libtpu: 0.0.40
codegen_flags: <defaults>
</compile_context>

<pallas_src>
import functools

import jax
import jax.numpy as jnp
from jax import lax
from jax.experimental import pallas as pl
from jax.experimental.pallas import tpu as pltpu


# ----------------------------- Pallas kernel -------------------------------

def _nin_block_kernel(p_ref, w1_ref, b1_ref, w2_ref, b2_ref, w3_ref, b3_ref,
                      o_ref):
    # p_ref : (tm, K)    bf16 im2col patches for tm output pixels (K unpadded)
    # w1_ref: (K, Cp)    bf16 big-conv weight (kh*kw*Cin -> Cout, Cout padded)
    # w2/w3 : (Cp, Cp)   bf16 1x1-conv weights (zero padded)
    # b*    : (1, Cp)    f32 biases (zero padded)
    # o_ref : (tm, Cp)   bf16 output
    h = jnp.dot(p_ref[...], w1_ref[...], preferred_element_type=jnp.float32)
    h = jnp.maximum(h + b1_ref[...], 0.0)                 # f32 epilogue (v5e)
    h = jnp.dot(h.astype(jnp.bfloat16), w2_ref[...],
                preferred_element_type=jnp.float32)
    h = jnp.maximum(h + b2_ref[...], 0.0)
    h = jnp.dot(h.astype(jnp.bfloat16), w3_ref[...],
                preferred_element_type=jnp.float32)
    h = jnp.maximum(h + b3_ref[...], 0.0)
    o_ref[...] = h.astype(o_ref.dtype)                    # bf16 store


# ------------------------------ sizing helpers ------------------------------

def _round_up(x, m):
    return ((x + m - 1) // m) * m


def _vmem_capacity_bytes():
    try:
        return int(pltpu.get_tpu_info().vmem_capacity_bytes)
    except Exception:
        return 64 * 1024 * 1024          # conservative fallback (v7x per-TC)


def _block_footprint_bytes(tm, k, cp, out_bytes=2):
    """Approximate VMEM footprint of one grid step."""
    return (2 * tm * k * 2                 # patches, bf16, double buffered
            + 2 * tm * cp * out_bytes      # output, bf16, double buffered
            + (k * cp + 2 * cp * cp) * 2   # weights, bf16, single buffered
            + 3 * cp * 4                   # biases, f32, single buffered
            + 3 * tm * cp * 4)             # in-body f32 intermediates


def _choose_tm(m, k, cp, vmem_budget):
    """Largest row tile whose footprint fits the VMEM budget while keeping
    enough grid depth for DMA/compute overlap: tiles > 512 need >= 8 steps
    (>= 4 per TensorCore on 2-TC v7x), tiles > 256 need >= 4, else >= 2."""
    for tm in (1024, 512, 256, 128):
        steps = pl.cdiv(m, tm)
        min_steps = 8 if tm > 512 else (4 if tm > 256 else 2)
        if tm > 128 and steps < min_steps:
            continue
        if tm == 128 or _block_footprint_bytes(tm, k, cp) <= vmem_budget:
            return tm
    return 128


# --------------------------- fused pallas_call ------------------------------

def _fused_nin_matmuls(patches, w1, b1, w2, b2, w3, b3, *, tm, vmem_limit):
    """patches: (Mp, K) bf16 with Mp % tm == 0; w1: (K, Cp) bf16;
    w2/w3: (Cp, Cp) bf16; b1/b2/b3: (1, Cp) f32. Returns (Mp, Cp) bf16."""
    Mp, K = patches.shape
    Cp = w1.shape[1]
    assert Mp % tm == 0
    grid = (Mp // tm,)

    cost = pl.CostEstimate(
        flops=2 * Mp * (K * Cp + 2 * Cp * Cp),
        transcendentals=0,
        bytes_accessed=(Mp * K * 2                     # patches in (bf16)
                        + (K * Cp + 2 * Cp * Cp) * 2   # weights in (bf16)
                        + 3 * Cp * 4                   # biases in (f32)
                        + Mp * Cp * 2))                # output out (bf16)

    once = pl.Buffered(1)   # resident operands: constant index_map, 1 buffer
    return pl.pallas_call(
        _nin_block_kernel,
        out_shape=jax.ShapeDtypeStruct((Mp, Cp), jnp.bfloat16),
        grid_spec=pltpu.PrefetchScalarGridSpec(
            num_scalar_prefetch=0,
            grid=grid,
            in_specs=[
                # streaming row-tiled patches (default double-buffering)
                pl.BlockSpec((tm, K), lambda i: (i, 0)),
                # resident weights / biases
                pl.BlockSpec((K, Cp), lambda i: (0, 0), pipeline_mode=once),
                pl.BlockSpec((1, Cp), lambda i: (0, 0), pipeline_mode=once),
                pl.BlockSpec((Cp, Cp), lambda i: (0, 0), pipeline_mode=once),
                pl.BlockSpec((1, Cp), lambda i: (0, 0), pipeline_mode=once),
                pl.BlockSpec((Cp, Cp), lambda i: (0, 0), pipeline_mode=once),
                pl.BlockSpec((1, Cp), lambda i: (0, 0), pipeline_mode=once),
            ],
            out_specs=pl.BlockSpec((tm, Cp), lambda i: (i, 0)),
        ),
        compiler_params=pltpu.CompilerParams(
            dimension_semantics=("parallel",),
            vmem_limit_bytes=int(vmem_limit)),
        cost_estimate=cost,
    )(patches, w1, b1, w2, b2, w3, b3)


# ------------------------------ glue (JAX) ----------------------------------

def _im2col_nhwc(x_nhwc, kh, kw, stride, padding):
    """Extract conv patches. Returns (N*Ho*Wo, kh*kw*Cin) with (kh, kw, Cin)
    ordering along the last axis (matches the W1 reshape below)."""
    N, H, W, Cin = x_nhwc.shape
    xp = jnp.pad(x_nhwc, ((0, 0), (padding, padding), (padding, padding),
                          (0, 0)))
    Ho = (H + 2 * padding - kh) // stride + 1
    Wo = (W + 2 * padding - kw) // stride + 1
    cols = []
    for i in range(kh):
        for j in range(kw):
            sl = xp[:, i:i + stride * Ho:stride, j:j + stride * Wo:stride, :]
            cols.append(sl)
    patches = jnp.concatenate(cols, axis=-1)           # (N, Ho, Wo, kh*kw*Cin)
    return patches.reshape(N * Ho * Wo, kh * kw * Cin), (N, Ho, Wo)


def nin_block_forward(x_nchw, params, *, kernel_size, stride, padding,
                      out_dtype=jnp.float32):
    """Forward pass of NiNBlock. x_nchw: (N, Cin, H, W) -> (N, Cout, Ho, Wo)."""
    kh, kw = kernel_size
    w1, b1, w2, b2, w3, b3 = (params["w1"], params["b1"], params["w2"],
                              params["b2"], params["w3"], params["b3"])
    Cout, Cin = w1.shape[0], w1.shape[1]

    # NCHW -> NHWC; cast to bf16 BEFORE im2col so the expanded patch
    # intermediate is materialized at half size.
    x_nhwc = jnp.transpose(x_nchw, (0, 2, 3, 1)).astype(jnp.bfloat16)
    patches, (N, Ho, Wo) = _im2col_nhwc(x_nhwc, kh, kw, stride, padding)
    M, K = patches.shape            # K = kh*kw*Cin, kept UNPADDED

    # Output-channel padding: 128 granularity (v5e native / lane-dense
    # minimum); 256 when Cout > 128 to match the 2x256x256 MXU on v6e/v7x.
    Cp = _round_up(Cout, 256) if Cout > 128 else _round_up(Cout, 128)

    # Generation-aware VMEM budget and row tile (computed ONCE, passed down).
    vmem_budget = min(_vmem_capacity_bytes() // 2, 48 * 1024 * 1024)
    tm = _choose_tm(M, K, Cp, vmem_budget)
    Mp = _round_up(M, tm)

    patches_p = jnp.pad(patches, ((0, Mp - M), (0, 0)))   # already bf16

    # torch weight (Cout, Cin, kh, kw) -> (kh, kw, Cin, Cout) -> (K, Cout).
    w1_mat = jnp.transpose(w1, (2, 3, 1, 0)).reshape(K, Cout)
    w1_mat = jnp.pad(w1_mat, ((0, 0), (0, Cp - Cout))).astype(jnp.bfloat16)
    # 1x1 conv weights (Cout, Cout, 1, 1) -> (Cin_of_conv, Cout), padded.
    # Padded channels carry zero bias and ReLU(0)=0, so zero rows/cols are
    # exactly correct through W2/W3.
    w2_mat = jnp.pad(jnp.transpose(w2[:, :, 0, 0], (1, 0)),
                     ((0, Cp - Cout), (0, Cp - Cout))).astype(jnp.bfloat16)
    w3_mat = jnp.pad(jnp.transpose(w3[:, :, 0, 0], (1, 0)),
                     ((0, Cp - Cout), (0, Cp - Cout))).astype(jnp.bfloat16)
    b1_p = jnp.pad(b1.reshape(1, Cout), ((0, 0), (0, Cp - Cout))).astype(jnp.float32)
    b2_p = jnp.pad(b2.reshape(1, Cout), ((0, 0), (0, Cp - Cout))).astype(jnp.float32)
    b3_p = jnp.pad(b3.reshape(1, Cout), ((0, 0), (0, Cp - Cout))).astype(jnp.float32)

    out_padded = _fused_nin_matmuls(patches_p, w1_mat, b1_p, w2_mat, b2_p,
                                    w3_mat, b3_p, tm=tm,
                                    vmem_limit=vmem_budget)
    # Slice / reshape / transpose in bf16; cast only at the very end.
    out_flat = out_padded[:M, :Cout]
    out_nhwc = out_flat.reshape(N, Ho, Wo, Cout)
    out_nchw = jnp.transpose(out_nhwc, (0, 3, 1, 2))
    return out_nchw.astype(out_dtype)


# --------------------------- parameter init --------------------------------

def init_nin_params(key, in_channels, out_channels, kernel_size):
    kh, kw = kernel_size
    ks = jax.random.split(key, 6)
    scale1 = 1.0 / (in_channels * kh * kw) ** 0.5
    scale2 = 1.0 / out_channels ** 0.5
    return {
        "w1": jax.random.normal(ks[0], (out_channels, in_channels, kh, kw),
                                jnp.float32) * scale1,
        "b1": jax.random.normal(ks[1], (out_channels,), jnp.float32) * scale1,
        "w2": jax.random.normal(ks[2], (out_channels, out_channels, 1, 1),
                                jnp.float32) * scale2,
        "b2": jax.random.normal(ks[3], (out_channels,), jnp.float32) * scale2,
        "w3": jax.random.normal(ks[4], (out_channels, out_channels, 1, 1),
                                jnp.float32) * scale2,
        "b3": jax.random.normal(ks[5], (out_channels,), jnp.float32) * scale2,
    }


# ------------------------------ reference ----------------------------------

def nin_block_reference(x_nchw, params, *, stride, padding):
    def conv(x, w, b, s, p):
        y = lax.conv_general_dilated(
            x, w, window_strides=(s, s), padding=[(p, p), (p, p)],
            dimension_numbers=("NCHW", "OIHW", "NCHW"))
        return jnp.maximum(y + b[None, :, None, None], 0.0)
    h = conv(x_nchw, params["w1"], params["b1"], stride, padding)
    h = conv(h, params["w2"], params["b2"], 1, 0)
    h = conv(h, params["w3"], params["b3"], 1, 0)
    return h


# --------------------------------- main ------------------------------------

if __name__ == "__main__":
    key = jax.random.PRNGKey(0)
    k_x, k_p = jax.random.split(key)

    N, Cin, H, W = 2, 4, 16, 16
    Cout = 32
    kernel_size = (3, 3)
    stride = 1
    padding = 1

    x = jax.random.normal(k_x, (N, Cin, H, W), jnp.float32)
    params = init_nin_params(k_p, Cin, Cout, kernel_size)

    fwd = jax.jit(functools.partial(nin_block_forward,
                                    kernel_size=kernel_size,
                                    stride=stride, padding=padding))
    out = fwd(x, params)
    out = jax.block_until_ready(out)

    ref = nin_block_reference(x, params, stride=stride, padding=padding)
    assert out.shape == ref.shape == (N, Cout, H, W)
    # bf16 MXU operands + bf16 output with f32 accumulation -> loosened
    # tolerance vs the f32 reference.
    assert jnp.allclose(out, ref, atol=5e-2, rtol=5e-2), (
        float(jnp.max(jnp.abs(out - ref))))

    print("KERNEL_OK")
</pallas_src>

<mosaic_0001>
module attributes {stable_mosaic.version = 11 : i64} {
  func.func @_nin_block_kernel(%arg0: i32, %arg1: memref<256x36xbf16, #tpu.memory_space<vmem>>, %arg2: memref<36x128xbf16, #tpu.memory_space<vmem>>, %arg3: memref<1x128xf32, #tpu.memory_space<vmem>>, %arg4: memref<128x128xbf16, #tpu.memory_space<vmem>>, %arg5: memref<1x128xf32, #tpu.memory_space<vmem>>, %arg6: memref<128x128xbf16, #tpu.memory_space<vmem>>, %arg7: memref<1x128xf32, #tpu.memory_space<vmem>>, %arg8: memref<256x128xbf16, #tpu.memory_space<vmem>>) attributes {dimension_semantics = [#tpu.dimension_semantics<parallel>], iteration_bounds = array<i64: 2>, scalar_prefetch = 0 : i64, scratch_operands = 0 : i64, tpu.core_type = #tpu.core_type<tc>, window_params = [{transform_indices = @transform_0, window_bounds = array<i64: 256, 36>}, {pipeline_mode = #tpu.pipeline_mode<synchronous>, transform_indices = @transform_1, window_bounds = array<i64: 36, 128>}, {pipeline_mode = #tpu.pipeline_mode<synchronous>, transform_indices = @transform_2, window_bounds = array<i64: 1, 128>}, {pipeline_mode = #tpu.pipeline_mode<synchronous>, transform_indices = @transform_3, window_bounds = array<i64: 128, 128>}, {pipeline_mode = #tpu.pipeline_mode<synchronous>, transform_indices = @transform_4, window_bounds = array<i64: 1, 128>}, {pipeline_mode = #tpu.pipeline_mode<synchronous>, transform_indices = @transform_5, window_bounds = array<i64: 128, 128>}, {pipeline_mode = #tpu.pipeline_mode<synchronous>, transform_indices = @transform_6, window_bounds = array<i64: 1, 128>}, {transform_indices = @transform_7, window_bounds = array<i64: 256, 128>}]} {
    %c0 = arith.constant 0 : index
    %c0_0 = arith.constant 0 : index
    %0 = vector.load %arg1[%c0, %c0_0] : memref<256x36xbf16, #tpu.memory_space<vmem>>, vector<256x36xbf16>
    %c0_1 = arith.constant 0 : index
    %c0_2 = arith.constant 0 : index
    %1 = vector.load %arg2[%c0_1, %c0_2] : memref<36x128xbf16, #tpu.memory_space<vmem>>, vector<36x128xbf16>
    %cst = arith.constant dense<0.000000e+00> : vector<256x128xf32>
    %2 = tpu.matmul %0, %1, %cst {dimension_numbers = #tpu.dot_dimension_numbers<[1], [0], [0], [1], [0, 0, 1, 1], [], []>} : vector<256x36xbf16>, vector<36x128xbf16>, vector<256x128xf32> -> vector<256x128xf32>
    %c0_3 = arith.constant 0 : index
    %c0_4 = arith.constant 0 : index
    %3 = vector.load %arg3[%c0_3, %c0_4] : memref<1x128xf32, #tpu.memory_space<vmem>>, vector<1x128xf32>
    %4 = vector.broadcast %3 : vector<1x128xf32> to vector<256x128xf32>
    %5 = arith.addf %2, %4 : vector<256x128xf32>
    %cst_5 = arith.constant 0.000000e+00 : f32
    %6 = vector.broadcast %cst_5 : f32 to vector<256x128xf32>
    %7 = arith.maximumf %5, %6 : vector<256x128xf32>
    %8 = arith.truncf %7 : vector<256x128xf32> to vector<256x128xbf16>
    %c0_6 = arith.constant 0 : index
    %c0_7 = arith.constant 0 : index
    %9 = vector.load %arg4[%c0_6, %c0_7] : memref<128x128xbf16, #tpu.memory_space<vmem>>, vector<128x128xbf16>
    %cst_8 = arith.constant dense<0.000000e+00> : vector<256x128xf32>
    %10 = tpu.matmul %8, %9, %cst_8 {dimension_numbers = #tpu.dot_dimension_numbers<[1], [0], [0], [1], [0, 0, 1, 1], [], []>} : vector<256x128xbf16>, vector<128x128xbf16>, vector<256x128xf32> -> vector<256x128xf32>
    %c0_9 = arith.constant 0 : index
    %c0_10 = arith.constant 0 : index
    %11 = vector.load %arg5[%c0_9, %c0_10] : memref<1x128xf32, #tpu.memory_space<vmem>>, vector<1x128xf32>
    %12 = vector.broadcast %11 : vector<1x128xf32> to vector<256x128xf32>
    %13 = arith.addf %10, %12 : vector<256x128xf32>
    %cst_11 = arith.constant 0.000000e+00 : f32
    %14 = vector.broadcast %cst_11 : f32 to vector<256x128xf32>
    %15 = arith.maximumf %13, %14 : vector<256x128xf32>
    %16 = arith.truncf %15 : vector<256x128xf32> to vector<256x128xbf16>
    %c0_12 = arith.constant 0 : index
    %c0_13 = arith.constant 0 : index
    %17 = vector.load %arg6[%c0_12, %c0_13] : memref<128x128xbf16, #tpu.memory_space<vmem>>, vector<128x128xbf16>
    %cst_14 = arith.constant dense<0.000000e+00> : vector<256x128xf32>
    %18 = tpu.matmul %16, %17, %cst_14 {dimension_numbers = #tpu.dot_dimension_numbers<[1], [0], [0], [1], [0, 0, 1, 1], [], []>} : vector<256x128xbf16>, vector<128x128xbf16>, vector<256x128xf32> -> vector<256x128xf32>
    %c0_15 = arith.constant 0 : index
    %c0_16 = arith.constant 0 : index
    %19 = vector.load %arg7[%c0_15, %c0_16] : memref<1x128xf32, #tpu.memory_space<vmem>>, vector<1x128xf32>
    %20 = vector.broadcast %19 : vector<1x128xf32> to vector<256x128xf32>
    %21 = arith.addf %18, %20 : vector<256x128xf32>
    %cst_17 = arith.constant 0.000000e+00 : f32
    %22 = vector.broadcast %cst_17 : f32 to vector<256x128xf32>
    %23 = arith.maximumf %21, %22 : vector<256x128xf32>
    %24 = arith.truncf %23 : vector<256x128xf32> to vector<256x128xbf16>
    %c0_18 = arith.constant 0 : index
    %c0_19 = arith.constant 0 : index
    %25 = vector.load %arg8[%c0_18, %c0_19] : memref<256x128xbf16, #tpu.memory_space<vmem>>, vector<256x128xbf16>
    tpu.vector_store %arg8[%c0_18, %c0_19], %24 {strides = array<i32>} : memref<256x128xbf16, #tpu.memory_space<vmem>>, vector<256x128xbf16>,
    return
  }
  func.func @transform_0(%arg0: i32) -> (i32, i32) {
    %c0_i32 = arith.constant 0 : i32
    %c0_i32_0 = arith.constant 0 : i32
    return %arg0, %c0_i32 : i32, i32
  }
  func.func @transform_1(%arg0: i32) -> (i32, i32) {
    %c0_i32 = arith.constant 0 : i32
    %c0_i32_0 = arith.constant 0 : i32
    %c0_i32_1 = arith.constant 0 : i32
    return %c0_i32, %c0_i32_0 : i32, i32
  }
  func.func @transform_2(%arg0: i32) -> (i32, i32) {
    %c0_i32 = arith.constant 0 : i32
    %c0_i32_0 = arith.constant 0 : i32
    %c0_i32_1 = arith.constant 0 : i32
    return %c0_i32, %c0_i32_0 : i32, i32
  }
  func.func @transform_3(%arg0: i32) -> (i32, i32) {
    %c0_i32 = arith.constant 0 : i32
    %c0_i32_0 = arith.constant 0 : i32
    %c0_i32_1 = arith.constant 0 : i32
    return %c0_i32, %c0_i32_0 : i32, i32
  }
  func.func @transform_4(%arg0: i32) -> (i32, i32) {
    %c0_i32 = arith.constant 0 : i32
    %c0_i32_0 = arith.constant 0 : i32
    %c0_i32_1 = arith.constant 0 : i32
    return %c0_i32, %c0_i32_0 : i32, i32
  }
  func.func @transform_5(%arg0: i32) -> (i32, i32) {
    %c0_i32 = arith.constant 0 : i32
    %c0_i32_0 = arith.constant 0 : i32
    %c0_i32_1 = arith.constant 0 : i32
    return %c0_i32, %c0_i32_0 : i32, i32
  }
  func.func @transform_6(%arg0: i32) -> (i32, i32) {
    %c0_i32 = arith.constant 0 : i32
    %c0_i32_0 = arith.constant 0 : i32
    %c0_i32_1 = arith.constant 0 : i32
    return %c0_i32, %c0_i32_0 : i32, i32
  }
  func.func @transform_7(%arg0: i32) -> (i32, i32) {
    %c0_i32 = arith.constant 0 : i32
    %c0_i32_0 = arith.constant 0 : i32
    return %arg0, %c0_i32 : i32, i32
  }
}

</mosaic_0001>

<bundles_post_ra>
// kernel: nin_block_forward.1
= control target key start
LH: loop header
LB: loop body
LE: loop exit
PB: predicated region body
PF: predicated region fallthrough
CT: control target
= control target key end

     0   :  { %s1968_s24 = smov 0   ;;  %s2218_s0 = inlined_call_operand.vmem [shape: bf16[512,36], index: 0, kind: input, shape index: {}]   ;;  %s2219_s1 = inlined_call_operand.vmem [shape: bf16[36,128], index: 1, kind: input, shape index: {}]   ;;  %s2220_s2 = inlined_call_operand.vmem [shape: f32[1,128], index: 2, kind: input, shape index: {}]   ;;  %s2221_s3 = inlined_call_operand.vmem [shape: bf16[128,128], index: 3, kind: input, shape index: {}]   ;;  %s2222_s4 = inlined_call_operand.vmem [shape: f32[1,128], index: 4, kind: input, shape index: {}]   ;;  %s2223_s5 = inlined_call_operand.vmem [shape: bf16[128,128], index: 5, kind: input, shape index: {}]   ;;  %s2224_s6 = inlined_call_operand.vmem [shape: f32[1,128], index: 6, kind: input, shape index: {}]   ;;  %s2225_s7 = inlined_call_operand.vmem [shape: bf16[512,128], index: 7, kind: output, shape index: {}]  }
   0x1 LB: > { %s1444_s25 = sadd.s32 4294967295, %s1926_s24   ;;  %p1448_p0 = scmp.ge.s32.totalorder %s1926_s24, 1  ;;  %s1926_s24 = sphi %s1968_s24, %s17_s24  }
   0x2   : > { %p238_p1 = scmp.lt.s32.totalorder %s1926_s24, 3 }
   0x4   : > { %p239_p2 = pnand %p1448_p0, %p238_p1 }
   0x5   : > { %v1885_v0 = vld [vmem:[%s2219_s1] sm:$0xff] (!%p239_p2)   ;;  %v1886_v1 = vld [vmem:[%s2219_s1 + $0x8] sm:$0xff] (!%p239_p2)   ;;  %s1449_s30 = sshll.u32 (!%p239_p2), %s1444_s25, 5  ;;  %v1887_v2 = vld [vmem:[%s2219_s1 + $0x10] ss:$0 sps:$4 sm:$0x33] (!%p239_p2)  }
   0x6   : > { %242 = sbr.rel (%p239_p2) target bundleno = 740 (0x2e4), region = 48  ;;  %1735 = vmatprep.subr.bf16.mxu0 (!%p239_p2), %v1885_v0  ;;  %p271_p3 = scmp.lt.s32.totalorder (!%p239_p2), %s1449_s30, 63  ;;  %1869 = vmatprep.subr.bf16.mxu1 (!%p239_p2), %v1885_v0  ;;  %vm471_vm0 = vcmask (!%p239_p2), 1041408   ;;  %vm422_vm1 = vcmask (!%p239_p2), 293888   ;;  %v1904_v3 = vld [vmem:[%s2221_s3] sm:$0xff] (!%p239_p2)   ;;  %v1905_v8 = vld [vmem:[%s2221_s3 + $0x8] sm:$0xff] (!%p239_p2)  }
   0x7   : > { %1736 = vmatpush3.bf16.msra.mxu0 (!%p239_p2), %v1885_v0  ;;  %1872 = vmatpush3.bf16.msra.mxu1 (!%p239_p2), %v1885_v0  ;;  %v473_v4 = vsel (!%p239_p2), %vm471_vm0, %v1887_v2, 0  ;;  %v1906_v14 = vld [vmem:[%s2221_s3 + $0x10] sm:$0xff] (!%p239_p2)   ;;  %v1907_v16 = vld [vmem:[%s2221_s3 + $0x18] sm:$0xff] (!%p239_p2)   ;;  %v1908_v20 = vld [vmem:[%s2221_s3 + $0x20] sm:$0xff] (!%p239_p2)  }
   0x8   : > { %1737 = vmatprep.subr.bf16.mxu0 (!%p239_p2), %v1886_v1  ;;  %1870 = vmatprep.subr.bf16.mxu1 (!%p239_p2), %v1886_v1  ;;  %v1909_v23 = vld [vmem:[%s2221_s3 + $0x28] sm:$0xff] (!%p239_p2)   ;;  %v1910_v26 = vld [vmem:[%s2221_s3 + $0x30] sm:$0xff] (!%p239_p2)   ;;  %v1911_v27 = vld [vmem:[%s2221_s3 + $0x38] sm:$0xff] (!%p239_p2)  }
   0x9   : > { %v1912_v28 = vld [vmem:[%s2223_s5] sm:$0xff] (!%p239_p2)   ;;  %v1913_v29 = vld [vmem:[%s2223_s5 + $0x8] sm:$0xff] (!%p239_p2)   ;;  %v1914_v30 = vld [vmem:[%s2223_s5 + $0x10] sm:$0xff] (!%p239_p2)  }
   0xa   : > { %v1915_v31 = vld [vmem:[%s2223_s5 + $0x18] sm:$0xff] (!%p239_p2)   ;;  %v1916_v32 = vld [vmem:[%s2223_s5 + $0x20] sm:$0xff] (!%p239_p2)   ;;  %v1917_v33 = vld [vmem:[%s2223_s5 + $0x28] sm:$0xff] (!%p239_p2)  }
   0xb   : > { %1738 = vmatpush3.bf16.msra.mxu0 (!%p239_p2), %v1886_v1  ;;  %1873 = vmatpush3.bf16.msra.mxu1 (!%p239_p2), %v1886_v1  ;;  %v2072_v34 = vld [vmem:[%s2220_s2] ss:$0 sm:$0xff] (!%p239_p2) }
   0xc   : > { %1875 = vmatprep.subr.msk.bf16.mxu0 (!%p239_p2), %vm471_vm0, %v1887_v2  ;;  %1876 = vmatprep.subr.msk.bf16.mxu1 (!%p239_p2), %vm471_vm0, %v1887_v2 }
   0xd   : > { %s2227_s30 = smov (!%p271_p3, %s1449_s30), 63 }
   0xe   : > { %s1450_s10 = sshll.u32 %s2227_s30, 2 }
   0xf   : > { %s1993_s13 = scalar_lea.vmem %s2218_s0, %s1450_s10  ;;  %1740 = vmatpush3.bf16.msra.mxu0 %v473_v4  ;;  %1874 = vmatpush3.bf16.msra.mxu1 %v473_v4  ;;  %s2169_s14 = scalar_lea.vmem %s2225_s7, %s1450_s10 }
  0x10   : > { %v1888_v5 = vld [vmem:[%s1993_s13] sm:$0xff]   ;;  %v1889_v6 = vld [vmem:[%s1993_s13 + $0x8] sm:$0xff]   ;;  %v1890_v7 = vld [vmem:[%s1993_s13 + $0x10] sm:$0xff]   ;;  %1773 = vmatprep.subr.bf16.mxu1 %v1904_v3  ;;  %1821 = vmatprep.subr.bf16.mxu0 %v1912_v28 }
  0x11   : > { %1741 = vmatprep.mubr.msk.bf16.mxu0 %vm422_vm1, %v1888_v5  ;;  %v1891_v9 = vld [vmem:[%s1993_s13 + $0x18] sm:$0xff]   ;;  %v1896_v10 = vld [vmem:[%s1993_s13 + $0x40] sm:$0xff]   ;;  %v1897_v11 = vld [vmem:[%s1993_s13 + $0x48] sm:$0xff]  }
  0x12   : > { %1742 = vmatmul.mubr.msk.bf16.vlgmr.msra.gmra.mrb[0].mxu0 %vm422_vm1, %v1889_v6  ;;  %1757 = vmatprep.mubr.msk.bf16.mxu1 %vm422_vm1, %v1896_v10  ;;  %v1898_v12 = vld [vmem:[%s1993_s13 + $0x50] sm:$0xff]   ;;  %v1892_v13 = vld [vmem:[%s1993_s13 + $0x20] sm:$0xff]   ;;  %v1899_v15 = vld [vmem:[%s1993_s13 + $0x58] sm:$0xff]  }
  0x13   : > { %1745 = vmatprep.mubr.msk.bf16.mxu0 %vm422_vm1, %v1890_v7  ;;  %1758 = vmatmul.mubr.msk.bf16.vlgmr.msra.gmra.mrb[0].mxu1 %vm422_vm1, %v1897_v11  ;;  %v1893_v17 = vld [vmem:[%s1993_s13 + $0x28] sm:$0xff]   ;;  %v1900_v18 = vld [vmem:[%s1993_s13 + $0x60] sm:$0xff]   ;;  %v1894_v19 = vld [vmem:[%s1993_s13 + $0x30] sm:$0xff]  }
  0x14   : > { %1761 = vmatprep.mubr.msk.bf16.mxu1 %vm422_vm1, %v1898_v12  ;;  %1774 = vmatpush3.bf16.msra.mxu1 %v1904_v3  ;;  %v1901_v21 = vld [vmem:[%s1993_s13 + $0x68] sm:$0xff]   ;;  %v1902_v22 = vld [vmem:[%s1993_s13 + $0x70] sm:$0xff]   ;;  %v1895_v24 = vld [vmem:[%s1993_s13 + $0x38] sm:$0xff]  }
  0x15   : > { %1775 = vmatprep.subr.bf16.mxu1 %v1905_v8  ;;  %v1903_v25 = vld [vmem:[%s1993_s13 + $0x78] sm:$0xff]   ;;  %1822 = vmatpush3.bf16.msra.mxu0 %v1912_v28 }
  0x16   : > { %1823 = vmatprep.subr.bf16.mxu0 %v1913_v29 }
  0x18   : > { %1776 = vmatpush3.bf16.msra.mxu1 %v1905_v8 }
  0x19   : > { %1777 = vmatprep.subr.bf16.mxu1 %v1906_v14  ;;  %1824 = vmatpush3.bf16.msra.mxu0 %v1913_v29 }
  0x1a   : > { %1746 = vmatmul.mubr.msk.bf16.gmra.mrb[4].mxu0 %vm422_vm1, %v1891_v9  ;;  %1825 = vmatprep.subr.bf16.mxu0 %v1914_v30 }
  0x1b   : > { %1749 = vmatprep.mubr.msk.bf16.mxu0 %vm422_vm1, %v1892_v13  ;;  %1762 = vmatmul.mubr.msk.bf16.gmra.mrb[4].mxu1 %vm422_vm1, %v1899_v15 }
  0x1c   : > { %1765 = vmatprep.mubr.msk.bf16.mxu1 %vm422_vm1, %v1900_v18  ;;  %1778 = vmatpush3.bf16.msra.mxu1 %v1906_v14 }
  0x1d   : > { %1779 = vmatprep.subr.bf16.mxu1 %v1907_v16  ;;  %1826 = vmatpush3.bf16.msra.mxu0 %v1914_v30 }
  0x1e   : > { %1827 = vmatprep.subr.bf16.mxu0 %v1915_v31 }
  0x20   : > { %1780 = vmatpush3.bf16.msra.mxu1 %v1907_v16 }
  0x21   : > { %1781 = vmatprep.subr.bf16.mxu1 %v1908_v20  ;;  %1828 = vmatpush3.bf16.msra.mxu0 %v1915_v31 }
  0x22   : > { %1750 = vmatmul.mubr.msk.bf16.gmra.mrb[8].mxu0 %vm422_vm1, %v1893_v17  ;;  %1829 = vmatprep.subr.bf16.mxu0 %v1916_v32 }
  0x23   : > { %1753 = vmatprep.mubr.msk.bf16.mxu0 %vm422_vm1, %v1894_v19  ;;  %1766 = vmatmul.mubr.msk.bf16.gmra.mrb[8].mxu1 %vm422_vm1, %v1901_v21 }
  0x24   : > { %1769 = vmatprep.mubr.msk.bf16.mxu1 %vm422_vm1, %v1902_v22  ;;  %1782 = vmatpush3.bf16.msra.mxu1 %v1908_v20 }
  0x25   : > { %1783 = vmatprep.subr.bf16.mxu1 %v1909_v23  ;;  %1830 = vmatpush3.bf16.msra.mxu0 %v1916_v32 }
  0x26   : > { %1831 = vmatprep.subr.bf16.mxu0 %v1917_v33 }
  0x28   : > { %1784 = vmatpush3.bf16.msra.mxu1 %v1909_v23 }
  0x29   : > { %1785 = vmatprep.subr.bf16.mxu1 %v1910_v26  ;;  %1832 = vmatpush3.bf16.msra.mxu0 %v1917_v33 }
  0x2a   : > { %1754 = vmatmul.mubr.msk.bf16.gmra.mrb[12].mxu0 %vm422_vm1, %v1895_v24 }
  0x2b   : > { %1770 = vmatmul.mubr.msk.bf16.gmra.mrb[12].mxu1 %vm422_vm1, %v1903_v25 }
  0x2c   : > { %1786 = vmatpush3.bf16.msra.mxu1 %v1910_v26 }
  0x2d   : > { %1787 = vmatprep.subr.bf16.mxu1 %v1911_v27 }
  0x30   : > { %1788 = vmatpush3.bf16.msra.mxu1 %v1911_v27 }
  0xe5   : > { %v1743_v35 = vpop.f32.mrb[0].mxu0 }
  0xe6   : > { %v518_v36 = vadd.f32 %v1743_v35, %v2072_v34  ;;  %v509_v37 = vpop.f32.mrb[1].mxu0  ;;  %v1759_v45 = vpop.f32.mrb[0].mxu1 }
  0xe7   : > { %v510_v38 = vadd.f32 %v2072_v34, %v509_v37  ;;  %v1744_v39 = vpop.f32.mrb[2].mxu0  ;;  %v582_v48 = vadd.f32 %v1759_v45, %v2072_v34  ;;  %v573_v49 = vpop.f32.mrb[1].mxu1 }
  0xe8   : > { %v521_v40 = vadd.f32 %v1744_v39, %v2072_v34  ;;  %v512_v41 = vpop.f32.mrb[3].mxu0  ;;  %v638_v43 = vmax.f32 %v518_v36, 0.0  ;;  %v574_v51 = vadd.f32 %v2072_v34, %v573_v49  ;;  %v1760_v52 = vpop.f32.mrb[2].mxu1 }
  0xe9   : > { %v513_v42 = vadd.f32 %v2072_v34, %v512_v41  ;;  %v636_v46 = vmax.f32 %v510_v38, 0.0  ;;  %v654_v55 = vmax.f32 %v582_v48, 0.0  ;;  %v585_v56 = vadd.f32 %v1760_v52, %v2072_v34  ;;  %v576_v57 = vpop.f32.mrb[3].mxu1 }
  0xea   : > { %v639_v44 = vmax.f32 %v521_v40, 0.0  ;;  %v652_v60 = vmax.f32 %v574_v51, 0.0  ;;  %v577_v61 = vadd.f32 %v2072_v34, %v576_v57 }
  0xeb   : > { %v637_v47 = vmax.f32 %v513_v42, 0.0  ;;  %v655_v0 = vmax.f32 %v585_v56, 0.0 }
  0xec   : > { %v669_v50 = vpack.c.bf16 %v639_v44, %v638_v43  ;;  %v653_v3 = vmax.f32 %v577_v61, 0.0 }
  0xed   : > { %v668_v53 = vpack.c.bf16 %v637_v47, %v636_v46  ;;  %v1747_v54 = vpop.f32.mrb[4].mxu0  ;;  %v2086_v5 = vpack.c.bf16 %v655_v0, %v654_v55 }
  0xee   : > { %v534_v58 = vadd.f32 %v1747_v54, %v2072_v34  ;;  %v525_v59 = vpop.f32.mrb[5].mxu0  ;;  %v2088_v8 = vpack.c.bf16 %v653_v3, %v652_v60  ;;  %v1763_v9 = vpop.f32.mrb[4].mxu1 }
  0xef   : > { %v526_v62 = vadd.f32 %v2072_v34, %v525_v59  ;;  %v1748_v63 = vpop.f32.mrb[6].mxu0  ;;  %1789 = vmatprep.mubr.bf16.mxu1 %v668_v53  ;;  %v598_v12 = vadd.f32 %v1763_v9, %v2072_v34  ;;  %v589_v13 = vpop.f32.mrb[5].mxu1 }
  0xf0   : > { %v537_v1 = vadd.f32 %v1748_v63, %v2072_v34  ;;  %v528_v2 = vpop.f32.mrb[7].mxu0  ;;  %1790 = vmatmul.mubr.bf16.vlgmr.msra.gmra.mrb[16].mxu1 %v669_v50  ;;  %v642_v6 = vmax.f32 %v534_v58, 0.0  ;;  %v590_v15 = vadd.f32 %v2072_v34, %v589_v13  ;;  %v1764_v16 = vpop.f32.mrb[6].mxu1 }
  0xf1   : > { %v529_v4 = vadd.f32 %v2072_v34, %v528_v2  ;;  %v640_v10 = vmax.f32 %v526_v62, 0.0  ;;  %v658_v19 = vmax.f32 %v598_v12, 0.0  ;;  %v601_v20 = vadd.f32 %v1764_v16, %v2072_v34  ;;  %v592_v21 = vpop.f32.mrb[7].mxu1 }
  0xf2   : > { %v643_v7 = vmax.f32 %v537_v1, 0.0  ;;  %v656_v24 = vmax.f32 %v590_v15, 0.0  ;;  %v593_v25 = vadd.f32 %v2072_v34, %v592_v21 }
  0xf3   : > { %v641_v11 = vmax.f32 %v529_v4, 0.0  ;;  %v659_v28 = vmax.f32 %v601_v20, 0.0 }
  0xf4   : > { %v671_v14 = vpack.c.bf16 %v643_v7, %v642_v6  ;;  %v657_v31 = vmax.f32 %v593_v25, 0.0 }
  0xf5   : > { %v670_v17 = vpack.c.bf16 %v641_v11, %v640_v10  ;;  %v1751_v18 = vpop.f32.mrb[8].mxu0  ;;  %v679_v33 = vpack.c.bf16 %v659_v28, %v658_v19 }
  0xf6   : > { %v550_v22 = vadd.f32 %v1751_v18, %v2072_v34  ;;  %v541_v23 = vpop.f32.mrb[9].mxu0  ;;  %v678_v37 = vpack.c.bf16 %v657_v31, %v656_v24  ;;  %v1767_v38 = vpop.f32.mrb[8].mxu1 }
  0xf7   : > { %v542_v26 = vadd.f32 %v2072_v34, %v541_v23  ;;  %v1752_v27 = vpop.f32.mrb[10].mxu0  ;;  %1793 = vmatprep.mubr.bf16.mxu1 %v670_v17  ;;  %v614_v41 = vadd.f32 %v1767_v38, %v2072_v34  ;;  %v605_v42 = vpop.f32.mrb[9].mxu1 }
  0xf8   : > { %v553_v29 = vadd.f32 %v1752_v27, %v2072_v34  ;;  %v544_v30 = vpop.f32.mrb[11].mxu0  ;;  %1794 = vmatmul.mubr.bf16.gmra.mrb[20].mxu1 %v671_v14  ;;  %v646_v35 = vmax.f32 %v550_v22, 0.0  ;;  %v606_v44 = vadd.f32 %v2072_v34, %v605_v42  ;;  %v1768_v45 = vpop.f32.mrb[10].mxu1 }
  0xf9   : > { %v545_v32 = vadd.f32 %v2072_v34, %v544_v30  ;;  %v644_v39 = vmax.f32 %v542_v26, 0.0  ;;  %v662_v48 = vmax.f32 %v614_v41, 0.0  ;;  %v617_v49 = vadd.f32 %v1768_v45, %v2072_v34  ;;  %v608_v50 = vpop.f32.mrb[11].mxu1 }
  0xfa   : > { %v647_v36 = vmax.f32 %v553_v29, 0.0  ;;  %v660_v53 = vmax.f32 %v606_v44, 0.0  ;;  %v609_v54 = vadd.f32 %v2072_v34, %v608_v50 }
  0xfb   : > { %v645_v40 = vmax.f32 %v545_v32, 0.0  ;;  %v663_v57 = vmax.f32 %v617_v49, 0.0 }
  0xfc   : > { %v673_v43 = vpack.c.bf16 %v647_v36, %v646_v35  ;;  %v661_v60 = vmax.f32 %v609_v54, 0.0 }
  0xfd   : > { %v672_v46 = vpack.c.bf16 %v645_v40, %v644_v39  ;;  %v1755_v47 = vpop.f32.mrb[12].mxu0  ;;  %v681_v62 = vpack.c.bf16 %v663_v57, %v662_v48 }
  0xfe   : > { %v566_v51 = vadd.f32 %v1755_v47, %v2072_v34  ;;  %v557_v52 = vpop.f32.mrb[13].mxu0  ;;  %v680_v1 = vpack.c.bf16 %v661_v60, %v660_v53  ;;  %v1771_v2 = vpop.f32.mrb[12].mxu1 }
  0xff   : > { %v558_v55 = vadd.f32 %v2072_v34, %v557_v52  ;;  %v1756_v56 = vpop.f32.mrb[14].mxu0  ;;  %1797 = vmatprep.mubr.bf16.mxu1 %v672_v46  ;;  %v630_v6 = vadd.f32 %v1771_v2, %v2072_v34  ;;  %v621_v7 = vpop.f32.mrb[13].mxu1 }
 0x100   : > { %v569_v58 = vadd.f32 %v1756_v56, %v2072_v34  ;;  %v560_v59 = vpop.f32.mrb[15].mxu0  ;;  %1798 = vmatmul.mubr.bf16.gmra.mrb[24].mxu1 %v673_v43  ;;  %v650_v63 = vmax.f32 %v566_v51, 0.0  ;;  %v622_v10 = vadd.f32 %v2072_v34, %v621_v7  ;;  %v1772_v11 = vpop.f32.mrb[14].mxu1 }
 0x101   : > { %v561_v61 = vadd.f32 %v2072_v34, %v560_v59  ;;  %v648_v3 = vmax.f32 %v558_v55, 0.0  ;;  %v666_v13 = vmax.f32 %v630_v6, 0.0  ;;  %v633_v14 = vadd.f32 %v1772_v11, %v2072_v34  ;;  %v624_v15 = vpop.f32.mrb[15].mxu1 }
 0x102   : > { %v651_v0 = vmax.f32 %v569_v58, 0.0  ;;  %v664_v16 = vmax.f32 %v622_v10, 0.0  ;;  %v625_v17 = vadd.f32 %v2072_v34, %v624_v15  ;;  %v1918_v34 = vld [vmem:[%s2223_s5 + $0x30] sm:$0xff]  }
 0x103   : > { %v649_v4 = vmax.f32 %v561_v61, 0.0  ;;  %v667_v18 = vmax.f32 %v633_v14, 0.0  ;;  %1833 = vmatprep.subr.bf16.mxu0 %v1918_v34 }
 0x104   : > { %v675_v9 = vpack.c.bf16 %v651_v0, %v650_v63  ;;  %v665_v19 = vmax.f32 %v625_v17, 0.0  ;;  %1834 = vmatpush3.bf16.msra.mxu0 %v1918_v34 }
 0x105   : > { %v674_v12 = vpack.c.bf16 %v649_v4, %v648_v3  ;;  %v683_v20 = vpack.c.bf16 %v667_v18, %v666_v13 }
 0x106   : > { %v682_v21 = vpack.c.bf16 %v665_v19, %v664_v16 }
 0x107   : > { %1801 = vmatprep.mubr.bf16.mxu1 %v674_v12 }
 0x108   : > { %1802 = vmatmul.mubr.bf16.gmra.mrb[28].mxu1 %v675_v9 }
 0x109   : > { %1805 = vmatprep.mubr.bf16.mxu1 %v2088_v8  ;;  %v1919_v8 = vld [vmem:[%s2223_s5 + $0x38] sm:$0xff]  }
 0x10a   : > { %1835 = vmatprep.subr.bf16.mxu0 %v1919_v8 }
 0x10b   : > { %1836 = vmatpush3.bf16.msra.mxu0 %v1919_v8 }
 0x110   : > { %1806 = vmatmul.mubr.bf16.gmra.mrb[32].mxu1 %v2086_v5  ;;  %v2121_v5 = vld [vmem:[%s2222_s4] ss:$0 sm:$0xff] }
 0x111   : > { %1809 = vmatprep.mubr.bf16.mxu1 %v678_v37 }
 0x118   : > { %1810 = vmatmul.mubr.bf16.gmra.mrb[36].mxu1 %v679_v33 }
 0x119   : > { %1813 = vmatprep.mubr.bf16.mxu1 %v680_v1 }
 0x120   : > { %1814 = vmatmul.mubr.bf16.gmra.mrb[40].mxu1 %v681_v62 }
 0x121   : > { %1817 = vmatprep.mubr.bf16.mxu1 %v682_v21 }
 0x128   : > { %1818 = vmatmul.mubr.bf16.gmra.mrb[44].mxu1 %v683_v20 }
 0x1c3   : > { %v1791_v22 = vpop.f32.mrb[16].mxu1 }
 0x1c4   : > { %v798_v23 = vadd.f32 %v1791_v22, %v2121_v5  ;;  %v789_v24 = vpop.f32.mrb[17].mxu1 }
 0x1c5   : > { %v790_v25 = vadd.f32 %v2121_v5, %v789_v24  ;;  %v1792_v26 = vpop.f32.mrb[18].mxu1 }
 0x1c6   : > { %v801_v27 = vadd.f32 %v1792_v26, %v2121_v5  ;;  %v792_v28 = vpop.f32.mrb[19].mxu1  ;;  %v918_v30 = vmax.f32 %v798_v23, 0.0 }
 0x1c7   : > { %v793_v29 = vadd.f32 %v2121_v5, %v792_v28  ;;  %v916_v32 = vmax.f32 %v790_v25, 0.0 }
 0x1c8   : > { %v919_v31 = vmax.f32 %v801_v27, 0.0 }
 0x1c9   : > { %v917_v33 = vmax.f32 %v793_v29, 0.0 }
 0x1ca   : > { %v949_v35 = vpack.c.bf16 %v919_v31, %v918_v30 }
 0x1cb   : > { %v948_v36 = vpack.c.bf16 %v917_v33, %v916_v32  ;;  %v1795_v37 = vpop.f32.mrb[20].mxu1 }
 0x1cc   : > { %v814_v38 = vadd.f32 %v1795_v37, %v2121_v5  ;;  %v805_v39 = vpop.f32.mrb[21].mxu1 }
 0x1cd   : > { %v806_v40 = vadd.f32 %v2121_v5, %v805_v39  ;;  %v1796_v41 = vpop.f32.mrb[22].mxu1  ;;  %1837 = vmatprep.mubr.bf16.mxu0 %v948_v36 }
 0x1ce   : > { %v817_v42 = vadd.f32 %v1796_v41, %v2121_v5  ;;  %v808_v43 = vpop.f32.mrb[23].mxu1  ;;  %1838 = vmatmul.mubr.bf16.vlgmr.msra.gmra.mrb[16].mxu0 %v949_v35  ;;  %v922_v45 = vmax.f32 %v814_v38, 0.0 }
 0x1cf   : > { %v809_v44 = vadd.f32 %v2121_v5, %v808_v43  ;;  %v920_v47 = vmax.f32 %v806_v40, 0.0 }
 0x1d0   : > { %v923_v46 = vmax.f32 %v817_v42, 0.0 }
 0x1d1   : > { %v921_v48 = vmax.f32 %v809_v44, 0.0 }
 0x1d2   : > { %v951_v49 = vpack.c.bf16 %v923_v46, %v922_v45 }
 0x1d3   : > { %v950_v50 = vpack.c.bf16 %v921_v48, %v920_v47  ;;  %v1799_v51 = vpop.f32.mrb[24].mxu1 }
 0x1d4   : > { %v830_v52 = vadd.f32 %v1799_v51, %v2121_v5  ;;  %v821_v53 = vpop.f32.mrb[25].mxu1 }
 0x1d5   : > { %v822_v54 = vadd.f32 %v2121_v5, %v821_v53  ;;  %v1800_v55 = vpop.f32.mrb[26].mxu1  ;;  %1841 = vmatprep.mubr.bf16.mxu0 %v950_v50 }
 0x1d6   : > { %v833_v56 = vadd.f32 %v1800_v55, %v2121_v5  ;;  %v824_v57 = vpop.f32.mrb[27].mxu1  ;;  %1842 = vmatmul.mubr.bf16.gmra.mrb[20].mxu0 %v951_v49  ;;  %v926_v59 = vmax.f32 %v830_v52, 0.0 }
 0x1d7   : > { %v825_v58 = vadd.f32 %v2121_v5, %v824_v57  ;;  %v924_v61 = vmax.f32 %v822_v54, 0.0 }
 0x1d8   : > { %v927_v60 = vmax.f32 %v833_v56, 0.0 }
 0x1d9   : > { %v925_v62 = vmax.f32 %v825_v58, 0.0 }
 0x1da   : > { %v953_v63 = vpack.c.bf16 %v927_v60, %v926_v59 }
 0x1db   : > { %v952_v0 = vpack.c.bf16 %v925_v62, %v924_v61  ;;  %v1803_v1 = vpop.f32.mrb[28].mxu1 }
 0x1dc   : > { %v846_v2 = vadd.f32 %v1803_v1, %v2121_v5  ;;  %v837_v3 = vpop.f32.mrb[29].mxu1 }
 0x1dd   : > { %v838_v4 = vadd.f32 %v2121_v5, %v837_v3  ;;  %v1804_v6 = vpop.f32.mrb[30].mxu1  ;;  %1845 = vmatprep.mubr.bf16.mxu0 %v952_v0 }
 0x1de   : > { %v849_v7 = vadd.f32 %v1804_v6, %v2121_v5  ;;  %v840_v9 = vpop.f32.mrb[31].mxu1  ;;  %1846 = vmatmul.mubr.bf16.gmra.mrb[24].mxu0 %v953_v63  ;;  %v930_v11 = vmax.f32 %v846_v2, 0.0 }
 0x1df   : > { %v841_v10 = vadd.f32 %v2121_v5, %v840_v9  ;;  %v928_v13 = vmax.f32 %v838_v4, 0.0 }
 0x1e0   : > { %v931_v12 = vmax.f32 %v849_v7, 0.0 }
 0x1e1   : > { %v929_v14 = vmax.f32 %v841_v10, 0.0  ;;  %v2158_v10 = vld [vmem:[%s2224_s6] ss:$0 sm:$0xff] }
 0x1e2   : > { %v955_v15 = vpack.c.bf16 %v931_v12, %v930_v11 }
 0x1e3   : > { %v954_v16 = vpack.c.bf16 %v929_v14, %v928_v13  ;;  %v1807_v17 = vpop.f32.mrb[32].mxu1 }
 0x1e4   : > { %v862_v18 = vadd.f32 %v1807_v17, %v2121_v5  ;;  %v853_v19 = vpop.f32.mrb[33].mxu1 }
 0x1e5   : > { %v854_v20 = vadd.f32 %v2121_v5, %v853_v19  ;;  %v1808_v21 = vpop.f32.mrb[34].mxu1  ;;  %1849 = vmatprep.mubr.bf16.mxu0 %v954_v16 }
 0x1e6   : > { %v865_v34 = vadd.f32 %v1808_v21, %v2121_v5  ;;  %v856_v8 = vpop.f32.mrb[35].mxu1  ;;  %1850 = vmatmul.mubr.bf16.gmra.mrb[28].mxu0 %v955_v15  ;;  %v934_v23 = vmax.f32 %v862_v18, 0.0 }
 0x1e7   : > { %v857_v22 = vadd.f32 %v2121_v5, %v856_v8  ;;  %v932_v25 = vmax.f32 %v854_v20, 0.0 }
 0x1e8   : > { %v935_v24 = vmax.f32 %v865_v34, 0.0 }
 0x1e9   : > { %v933_v26 = vmax.f32 %v857_v22, 0.0 }
 0x1ea   : > { %v957_v27 = vpack.c.bf16 %v935_v24, %v934_v23 }
 0x1eb   : > { %v956_v28 = vpack.c.bf16 %v933_v26, %v932_v25  ;;  %v1811_v29 = vpop.f32.mrb[36].mxu1 }
 0x1ec   : > { %v878_v30 = vadd.f32 %v1811_v29, %v2121_v5  ;;  %v869_v31 = vpop.f32.mrb[37].mxu1 }
 0x1ed   : > { %v870_v32 = vadd.f32 %v2121_v5, %v869_v31  ;;  %v1812_v33 = vpop.f32.mrb[38].mxu1  ;;  %1853 = vmatprep.mubr.bf16.mxu0 %v956_v28 }
 0x1ee   : > { %v881_v35 = vadd.f32 %v1812_v33, %v2121_v5  ;;  %v872_v36 = vpop.f32.mrb[39].mxu1  ;;  %1854 = vmatmul.mubr.bf16.gmra.mrb[32].mxu0 %v957_v27  ;;  %v938_v38 = vmax.f32 %v878_v30, 0.0 }
 0x1ef   : > { %v873_v37 = vadd.f32 %v2121_v5, %v872_v36  ;;  %v936_v40 = vmax.f32 %v870_v32, 0.0 }
 0x1f0   : > { %v939_v39 = vmax.f32 %v881_v35, 0.0 }
 0x1f1   : > { %v937_v41 = vmax.f32 %v873_v37, 0.0 }
 0x1f2   : > { %v959_v42 = vpack.c.bf16 %v939_v39, %v938_v38 }
 0x1f3   : > { %v958_v43 = vpack.c.bf16 %v937_v41, %v936_v40  ;;  %v1815_v44 = vpop.f32.mrb[40].mxu1 }
 0x1f4   : > { %v894_v45 = vadd.f32 %v1815_v44, %v2121_v5  ;;  %v885_v46 = vpop.f32.mrb[41].mxu1 }
 0x1f5   : > { %v886_v47 = vadd.f32 %v2121_v5, %v885_v46  ;;  %v1816_v48 = vpop.f32.mrb[42].mxu1  ;;  %1857 = vmatprep.mubr.bf16.mxu0 %v958_v43 }
 0x1f6   : > { %v897_v49 = vadd.f32 %v1816_v48, %v2121_v5  ;;  %v888_v50 = vpop.f32.mrb[43].mxu1  ;;  %1858 = vmatmul.mubr.bf16.gmra.mrb[36].mxu0 %v959_v42  ;;  %v942_v52 = vmax.f32 %v894_v45, 0.0 }
 0x1f7   : > { %v889_v51 = vadd.f32 %v2121_v5, %v888_v50  ;;  %v940_v54 = vmax.f32 %v886_v47, 0.0 }
 0x1f8   : > { %v943_v53 = vmax.f32 %v897_v49, 0.0 }
 0x1f9   : > { %v941_v55 = vmax.f32 %v889_v51, 0.0 }
 0x1fa   : > { %v961_v56 = vpack.c.bf16 %v943_v53, %v942_v52 }
 0x1fb   : > { %v960_v57 = vpack.c.bf16 %v941_v55, %v940_v54  ;;  %v1819_v58 = vpop.f32.mrb[44].mxu1 }
 0x1fc   : > { %v910_v59 = vadd.f32 %v1819_v58, %v2121_v5  ;;  %v901_v60 = vpop.f32.mrb[45].mxu1 }
 0x1fd   : > { %v902_v61 = vadd.f32 %v2121_v5, %v901_v60  ;;  %v1820_v62 = vpop.f32.mrb[46].mxu1  ;;  %1861 = vmatprep.mubr.bf16.mxu0 %v960_v57 }
 0x1fe   : > { %v913_v63 = vadd.f32 %v1820_v62, %v2121_v5  ;;  %v904_v0 = vpop.f32.mrb[47].mxu1  ;;  %1862 = vmatmul.mubr.bf16.gmra.mrb[40].mxu0 %v961_v56  ;;  %v946_v2 = vmax.f32 %v910_v59, 0.0 }
 0x1ff   : > { %v905_v1 = vadd.f32 %v2121_v5, %v904_v0  ;;  %v944_v4 = vmax.f32 %v902_v61, 0.0 }
 0x200   : > { %v947_v3 = vmax.f32 %v913_v63, 0.0 }
 0x201   : > { %v945_v6 = vmax.f32 %v905_v1, 0.0 }
 0x202   : > { %v963_v7 = vpack.c.bf16 %v947_v3, %v946_v2 }
 0x203   : > { %v962_v9 = vpack.c.bf16 %v945_v6, %v944_v4 }
 0x205   : > { %1865 = vmatprep.mubr.bf16.mxu0 %v962_v9 }
 0x206   : > { %1866 = vmatmul.mubr.bf16.gmra.mrb[44].mxu0 %v963_v7 }
 0x2a1   : > { %v1839_v11 = vpop.f32.mrb[16].mxu0 }
 0x2a2   : > { %v1078_v12 = vadd.f32 %v1839_v11, %v2158_v10  ;;  %v1069_v13 = vpop.f32.mrb[17].mxu0 }
 0x2a3   : > { %v1070_v5 = vadd.f32 %v2158_v10, %v1069_v13  ;;  %v1840_v14 = vpop.f32.mrb[18].mxu0 }
 0x2a4   : > { %v1081_v15 = vadd.f32 %v1840_v14, %v2158_v10  ;;  %v1072_v16 = vpop.f32.mrb[19].mxu0  ;;  %v1198_v18 = vmax.f32 %v1078_v12, 0.0 }
 0x2a5   : > { %v1073_v17 = vadd.f32 %v2158_v10, %v1072_v16  ;;  %v1196_v20 = vmax.f32 %v1070_v5, 0.0 }
 0x2a6   : > { %v1199_v19 = vmax.f32 %v1081_v15, 0.0 }
 0x2a7   : > { %v1197_v21 = vmax.f32 %v1073_v17, 0.0 }
 0x2a8   : > { %v1581_v34 = vpack.c.bf16 %v1199_v19, %v1198_v18 }
 0x2a9   : > { %v1576_v8 = vpack.c.bf16 %v1197_v21, %v1196_v20  ;;  %v1843_v22 = vpop.f32.mrb[20].mxu0 }
 0x2aa   : > { %1653 = vst [vmem:[%s2169_s14 + $0x8] sm:$0xff] %v1581_v34   ;;  %v1094_v23 = vadd.f32 %v1843_v22, %v2158_v10  ;;  %v1085_v24 = vpop.f32.mrb[21].mxu0 }
 0x2ab   : > { %1577 = vst [vmem:[%s2169_s14] sm:$0xff] %v1576_v8   ;;  %v1086_v25 = vadd.f32 %v2158_v10, %v1085_v24  ;;  %v1844_v26 = vpop.f32.mrb[22].mxu0 }
 0x2ac   : > { %v1097_v27 = vadd.f32 %v1844_v26, %v2158_v10  ;;  %v1088_v28 = vpop.f32.mrb[23].mxu0  ;;  %v1202_v30 = vmax.f32 %v1094_v23, 0.0 }
 0x2ad   : > { %v1089_v29 = vadd.f32 %v2158_v10, %v1088_v28  ;;  %v1200_v32 = vmax.f32 %v1086_v25, 0.0 }
 0x2ae   : > { %v1203_v31 = vmax.f32 %v1097_v27, 0.0 }
 0x2af   : > { %v1201_v33 = vmax.f32 %v1089_v29, 0.0 }
 0x2b0   : > { %v1591_v35 = vpack.c.bf16 %v1203_v31, %v1202_v30 }
 0x2b1   : > { %v1586_v36 = vpack.c.bf16 %v1201_v33, %v1200_v32  ;;  %v1847_v37 = vpop.f32.mrb[24].mxu0 }
 0x2b2   : > { %1655 = vst [vmem:[%s2169_s14 + $0x18] sm:$0xff] %v1591_v35   ;;  %v1110_v38 = vadd.f32 %v1847_v37, %v2158_v10  ;;  %v1101_v39 = vpop.f32.mrb[25].mxu0 }
 0x2b3   : > { %1654 = vst [vmem:[%s2169_s14 + $0x10] sm:$0xff] %v1586_v36   ;;  %v1102_v40 = vadd.f32 %v2158_v10, %v1101_v39  ;;  %v1848_v41 = vpop.f32.mrb[26].mxu0 }
 0x2b4   : > { %v1113_v42 = vadd.f32 %v1848_v41, %v2158_v10  ;;  %v1104_v43 = vpop.f32.mrb[27].mxu0  ;;  %v1206_v45 = vmax.f32 %v1110_v38, 0.0 }
 0x2b5   : > { %v1105_v44 = vadd.f32 %v2158_v10, %v1104_v43  ;;  %v1204_v47 = vmax.f32 %v1102_v40, 0.0 }
 0x2b6   : > { %v1207_v46 = vmax.f32 %v1113_v42, 0.0 }
 0x2b7   : > { %v1205_v48 = vmax.f32 %v1105_v44, 0.0 }
 0x2b8   : > { %v1601_v49 = vpack.c.bf16 %v1207_v46, %v1206_v45 }
 0x2b9   : > { %v1596_v50 = vpack.c.bf16 %v1205_v48, %v1204_v47  ;;  %v1851_v51 = vpop.f32.mrb[28].mxu0 }
 0x2ba   : > { %1657 = vst [vmem:[%s2169_s14 + $0x28] sm:$0xff] %v1601_v49   ;;  %v1126_v52 = vadd.f32 %v1851_v51, %v2158_v10  ;;  %v1117_v53 = vpop.f32.mrb[29].mxu0 }
 0x2bb   : > { %1656 = vst [vmem:[%s2169_s14 + $0x20] sm:$0xff] %v1596_v50   ;;  %v1118_v54 = vadd.f32 %v2158_v10, %v1117_v53  ;;  %v1852_v55 = vpop.f32.mrb[30].mxu0 }
 0x2bc   : > { %v1129_v56 = vadd.f32 %v1852_v55, %v2158_v10  ;;  %v1120_v57 = vpop.f32.mrb[31].mxu0  ;;  %v1210_v59 = vmax.f32 %v1126_v52, 0.0 }
 0x2bd   : > { %v1121_v58 = vadd.f32 %v2158_v10, %v1120_v57  ;;  %v1208_v61 = vmax.f32 %v1118_v54, 0.0 }
 0x2be   : > { %v1211_v60 = vmax.f32 %v1129_v56, 0.0 }
 0x2bf   : > { %v1209_v62 = vmax.f32 %v1121_v58, 0.0 }
 0x2c0   : > { %v1611_v63 = vpack.c.bf16 %v1211_v60, %v1210_v59 }
 0x2c1   : > { %v1606_v0 = vpack.c.bf16 %v1209_v62, %v1208_v61  ;;  %v1855_v1 = vpop.f32.mrb[32].mxu0 }
 0x2c2   : > { %1659 = vst [vmem:[%s2169_s14 + $0x38] sm:$0xff] %v1611_v63   ;;  %v1142_v2 = vadd.f32 %v1855_v1, %v2158_v10  ;;  %v1133_v3 = vpop.f32.mrb[33].mxu0 }
 0x2c3   : > { %1658 = vst [vmem:[%s2169_s14 + $0x30] sm:$0xff] %v1606_v0   ;;  %v1134_v4 = vadd.f32 %v2158_v10, %v1133_v3  ;;  %v1856_v6 = vpop.f32.mrb[34].mxu0 }
 0x2c4   : > { %v1145_v7 = vadd.f32 %v1856_v6, %v2158_v10  ;;  %v1136_v9 = vpop.f32.mrb[35].mxu0  ;;  %v1214_v12 = vmax.f32 %v1142_v2, 0.0 }
 0x2c5   : > { %v1137_v11 = vadd.f32 %v2158_v10, %v1136_v9  ;;  %v1212_v5 = vmax.f32 %v1134_v4, 0.0 }
 0x2c6   : > { %v1215_v13 = vmax.f32 %v1145_v7, 0.0 }
 0x2c7   : > { %v1213_v14 = vmax.f32 %v1137_v11, 0.0 }
 0x2c8   : > { %v1621_v15 = vpack.c.bf16 %v1215_v13, %v1214_v12 }
 0x2c9   : > { %v1616_v16 = vpack.c.bf16 %v1213_v14, %v1212_v5  ;;  %v1859_v17 = vpop.f32.mrb[36].mxu0 }
 0x2ca   : > { %1661 = vst [vmem:[%s2169_s14 + $0x48] sm:$0xff] %v1621_v15   ;;  %v1158_v18 = vadd.f32 %v1859_v17, %v2158_v10  ;;  %v1149_v19 = vpop.f32.mrb[37].mxu0 }
 0x2cb   : > { %1660 = vst [vmem:[%s2169_s14 + $0x40] sm:$0xff] %v1616_v16   ;;  %v1150_v20 = vadd.f32 %v2158_v10, %v1149_v19  ;;  %v1860_v21 = vpop.f32.mrb[38].mxu0 }
 0x2cc   : > { %v1161_v34 = vadd.f32 %v1860_v21, %v2158_v10  ;;  %v1152_v8 = vpop.f32.mrb[39].mxu0  ;;  %v1218_v23 = vmax.f32 %v1158_v18, 0.0 }
 0x2cd   : > { %v1153_v22 = vadd.f32 %v2158_v10, %v1152_v8  ;;  %v1216_v25 = vmax.f32 %v1150_v20, 0.0 }
 0x2ce   : > { %v1219_v24 = vmax.f32 %v1161_v34, 0.0 }
 0x2cf   : > { %v1217_v26 = vmax.f32 %v1153_v22, 0.0 }
 0x2d0   : > { %v1631_v27 = vpack.c.bf16 %v1219_v24, %v1218_v23 }
 0x2d1   : > { %v1626_v28 = vpack.c.bf16 %v1217_v26, %v1216_v25  ;;  %v1863_v29 = vpop.f32.mrb[40].mxu0 }
 0x2d2   : > { %1663 = vst [vmem:[%s2169_s14 + $0x58] sm:$0xff] %v1631_v27   ;;  %v1174_v30 = vadd.f32 %v1863_v29, %v2158_v10  ;;  %v1165_v31 = vpop.f32.mrb[41].mxu0 }
 0x2d3   : > { %1662 = vst [vmem:[%s2169_s14 + $0x50] sm:$0xff] %v1626_v28   ;;  %v1166_v32 = vadd.f32 %v2158_v10, %v1165_v31  ;;  %v1864_v33 = vpop.f32.mrb[42].mxu0 }
 0x2d4   : > { %v1177_v35 = vadd.f32 %v1864_v33, %v2158_v10  ;;  %v1168_v36 = vpop.f32.mrb[43].mxu0  ;;  %v1222_v38 = vmax.f32 %v1174_v30, 0.0 }
 0x2d5   : > { %v1169_v37 = vadd.f32 %v2158_v10, %v1168_v36  ;;  %v1220_v40 = vmax.f32 %v1166_v32, 0.0 }
 0x2d6   : > { %v1223_v39 = vmax.f32 %v1177_v35, 0.0 }
 0x2d7   : > { %v1221_v41 = vmax.f32 %v1169_v37, 0.0 }
 0x2d8   : > { %v1641_v42 = vpack.c.bf16 %v1223_v39, %v1222_v38 }
 0x2d9   : > { %v1636_v43 = vpack.c.bf16 %v1221_v41, %v1220_v40  ;;  %v1867_v44 = vpop.f32.mrb[44].mxu0 }
 0x2da   : > { %1665 = vst [vmem:[%s2169_s14 + $0x68] sm:$0xff] %v1641_v42   ;;  %v1190_v45 = vadd.f32 %v1867_v44, %v2158_v10  ;;  %v1181_v46 = vpop.f32.mrb[45].mxu0 }
 0x2db   : > { %1664 = vst [vmem:[%s2169_s14 + $0x60] sm:$0xff] %v1636_v43   ;;  %v1182_v47 = vadd.f32 %v2158_v10, %v1181_v46  ;;  %v1868_v48 = vpop.f32.mrb[46].mxu0 }
 0x2dc   : > { %v1193_v49 = vadd.f32 %v1868_v48, %v2158_v10  ;;  %v1184_v50 = vpop.f32.mrb[47].mxu0  ;;  %v1226_v52 = vmax.f32 %v1190_v45, 0.0 }
 0x2dd   : > { %v1185_v51 = vadd.f32 %v2158_v10, %v1184_v50  ;;  %v1224_v54 = vmax.f32 %v1182_v47, 0.0 }
 0x2de   : > { %v1227_v53 = vmax.f32 %v1193_v49, 0.0 }
 0x2df   : > { %v1225_v55 = vmax.f32 %v1185_v51, 0.0 }
 0x2e0   : > { %v1651_v56 = vpack.c.bf16 %v1227_v53, %v1226_v52 }
 0x2e1   : > { %v1646_v57 = vpack.c.bf16 %v1225_v55, %v1224_v54 }
 0x2e2   : > { %1667 = vst [vmem:[%s2169_s14 + $0x78] sm:$0xff] %v1651_v56  }
 0x2e3   : > { %1666 = vst [vmem:[%s2169_s14 + $0x70] sm:$0xff] %v1646_v57  }
 0x2e4 PF: > { %s17_s24 = sadd.s32 1, %s1926_s24  }
 0x2e5   : > { %p14_p4 = scmp.ge.s32.totalorder %s17_s24, 4  }
 0x2e7   :  { %16 = sbr.rel (!%p14_p4) target bundleno = 1 (0x1), region = 78 }

</bundles_post_ra>
